<compile_context>
chip_gen: v6e
topology: v6e:2x2x1
jax: 0.10.0
libtpu: 0.0.40
codegen_flags: <defaults>
</compile_context>

<pallas_src>
import math
import functools

import jax
import jax.numpy as jnp
from jax.experimental import pallas as pl
from jax.experimental.pallas import tpu as pltpu

BN_EPS = 1e-5
NEG_SLOPE = 0.2
LANE = 128
ROW_ALIGN = 16   # batch-tile row alignment (safe for bf16 sublane packing)


def _round_up(n, m):
    return ((n + m - 1) // m) * m


def _leaky_relu(x):
    return jnp.where(x >= 0, x, NEG_SLOPE * x)


# ----------------------------------------------------------------------------
# Kernel
# ----------------------------------------------------------------------------
def _make_fnn_kernel(n_linear):
    """Kernel over one batch tile: chain of (dot + bias [+ leaky_relu])."""

    def kernel(*refs):
        x_ref = refs[0]
        o_ref = refs[-1]
        wb = refs[1:-1]  # alternating (w, b) refs, BN already folded in

        h = x_ref[...]                  # f32 (tb, in_dim), straight from HBM
        for l in range(n_linear):
            w = wb[2 * l][...]          # bf16 (K, N), resident across grid
            b = wb[2 * l + 1][...]      # f32  (1, N)
            h = jnp.dot(h.astype(w.dtype), w,
                        preferred_element_type=jnp.float32) + b
            if l < n_linear - 1:
                h = _leaky_relu(h)      # f32 elementwise (v5e has no bf16 VPU)
        o_ref[...] = h.astype(o_ref.dtype)   # bf16 writeback, unpadded N

    return kernel


# ----------------------------------------------------------------------------
# Wrapper
# ----------------------------------------------------------------------------
def _auto_block_batch(batch):
    bp = _round_up(batch, ROW_ALIGN)
    if bp <= 256:
        return bp          # single grid step covers the whole batch
    return 256             # >=2 parallel steps (v7x 2nd TC), full MXU rows


@functools.partial(jax.jit, static_argnames=("out_dim", "block_batch"))
def fnn_forward(x, kernel_params, *, out_dim, block_batch=None):
    """x: (batch, input_dim) f32. kernel_params: folded/padded (w, b) tuple."""
    batch, in_dim = x.shape
    n_linear = len(kernel_params) // 2
    assert kernel_params[0].shape[0] == in_dim
    out_cols = kernel_params[-1].shape[-1]        # unpadded out_dim

    if block_batch is None:
        tb = _auto_block_batch(batch)
    else:
        tb = _round_up(max(int(block_batch), ROW_ALIGN), ROW_ALIGN)
    tb = min(tb, 512, _round_up(batch, ROW_ALIGN))
    bp = _round_up(batch, tb)

    # Only touch x when the batch needs padding; otherwise it goes straight
    # into the kernel (no wrapper-side pad/cast pass over the activations).
    xp = x if bp == batch else jnp.pad(x, ((0, bp - batch), (0, 0)))

    grid = (bp // tb,)

    in_specs = [pl.BlockSpec((tb, in_dim), lambda i: (i, 0))]
    for p in kernel_params:
        # Full array, constant block index -> fetched once, resident in VMEM.
        in_specs.append(pl.BlockSpec(p.shape, lambda i: (0, 0)))
    out_specs = pl.BlockSpec((tb, out_cols), lambda i: (i, 0))

    flops = 2 * bp * sum(int(w.shape[0]) * int(w.shape[1])
                         for w in kernel_params[0::2])
    param_bytes = sum(int(p.size) * p.dtype.itemsize for p in kernel_params)
    bytes_accessed = int(xp.size) * 4 + param_bytes + bp * out_cols * 2

    # TODO(synk): if param_bytes grows past ~8 MiB (realistic 2k-8k hidden
    # widths), whole-array weight residency no longer fits v7x's 64 MiB VMEM;
    # add a K/N grid axis over the weights instead.
    max_n = max(int(w.shape[1]) for w in kernel_params[0::2])
    tile_io = tb * in_dim * 4 + tb * out_cols * 2
    inter = 2 * tb * max_n * 4                      # live f32 intermediates
    vmem_limit = int(min(32 << 20,
                         max(4 << 20, 4 * (param_bytes + 2 * tile_io + inter))))

    out_padded = pl.pallas_call(
        _make_fnn_kernel(n_linear),
        out_shape=jax.ShapeDtypeStruct((bp, out_cols), jnp.bfloat16),
        grid_spec=pltpu.PrefetchScalarGridSpec(
            num_scalar_prefetch=0,
            grid=grid,
            in_specs=in_specs,
            out_specs=out_specs,
        ),
        compiler_params=pltpu.CompilerParams(
            dimension_semantics=("parallel",),   # shard batch across TCs (v7x)
            vmem_limit_bytes=vmem_limit,
        ),
        cost_estimate=pl.CostEstimate(
            flops=flops, transcendentals=0, bytes_accessed=bytes_accessed),
    )(xp, *kernel_params)

    return out_padded[:batch, :out_dim].astype(jnp.float32)


# ----------------------------------------------------------------------------
# Parameter construction
# ----------------------------------------------------------------------------
def init_raw_params(key, input_dim, out_dim, hidden_sizes):
    """PyTorch-shaped params (weights stored transposed as (in, out)).

    Linear weights: kaiming_normal_ defaults -> std = sqrt(2 / fan_in).
    Biases: PyTorch default U(-1/sqrt(fan_in), +1/sqrt(fan_in)).
    BatchNorm after hidden layer i when i % 2 == 0 (matches the module).
    BN params get non-trivial values so the fold path is exercised.
    """
    dims = [input_dim] + list(hidden_sizes) + [out_dim]
    n = len(dims) - 1
    keys = jax.random.split(key, 2 * n + 4 * len(hidden_sizes))

    ws, bs = [], []
    for i in range(n):
        fin, fout = dims[i], dims[i + 1]
        std = math.sqrt(2.0 / fin)
        ws.append(std * jax.random.normal(keys[2 * i], (fin, fout), jnp.float32))
        bound = 1.0 / math.sqrt(fin)
        bs.append(jax.random.uniform(keys[2 * i + 1], (fout,), jnp.float32,
                                     minval=-bound, maxval=bound))

    bn = {}
    koff = 2 * n
    for i, h in enumerate(hidden_sizes):
        if i % 2 == 0:
            k0, k1, k2, k3 = keys[koff:koff + 4]
            gamma = jax.random.uniform(k0, (h,), jnp.float32, minval=0.5, maxval=1.5)
            beta = 0.1 * jax.random.normal(k1, (h,), jnp.float32)
            mean = 0.1 * jax.random.normal(k2, (h,), jnp.float32)
            var = jax.random.uniform(k3, (h,), jnp.float32, minval=0.8, maxval=1.2)
            bn[i] = (gamma, beta, mean, var)
        koff += 4
    return {"w": ws, "b": bs, "bn": bn}


def prepare_kernel_params(raw, weight_dtype=jnp.bfloat16):
    """Fold eval-mode BN + bias into each Linear, pad hidden dims, cast.

    Returns a flat tuple (w1, b1, w2, b2, ...):
      * w bf16 (K, N_p), b f32 (1, N_p)
      * layer 0 keeps K = true in_dim (cuts the input DMA vs padding to 128)
      * hidden N's are zero-padded to 128-lane multiples (lane-dense matmuls)
      * the final layer's N = out_dim stays unpadded (minimal writeback bytes)
    Zero padding is exact: padded activation columns stay 0 through LeakyReLU,
    and padded weight rows are 0 for the next layer.
    """
    ws, bs, bn = raw["w"], raw["b"], raw["bn"]
    n = len(ws)
    params = []
    for i, (w, b) in enumerate(zip(ws, bs)):
        if i in bn:  # BN follows this (hidden) linear layer
            g, be, m, v = bn[i]
            scale = g * jax.lax.rsqrt(v + BN_EPS)
            w = w * scale[None, :]
            b = (b - m) * scale + be
        fin, fout = w.shape
        fin_p = fin if i == 0 else _round_up(fin, LANE)
        fout_p = fout if i == n - 1 else _round_up(fout, LANE)
        w_p = jnp.zeros((fin_p, fout_p), jnp.float32).at[:fin, :fout].set(w)
        b_p = jnp.zeros((1, fout_p), jnp.float32).at[0, :fout].set(b)
        params += [w_p.astype(weight_dtype), b_p]
    return tuple(params)


# ----------------------------------------------------------------------------
# Pure-JAX f32 reference (original module semantics, eval mode)
# ----------------------------------------------------------------------------
def fnn_reference(x, raw):
    ws, bs, bn = raw["w"], raw["b"], raw["bn"]
    n = len(ws)
    h = x
    for i, (w, b) in enumerate(zip(ws, bs)):
        h = h @ w + b
        if i < n - 1:
            if i in bn:
                g, be, m, v = bn[i]
                h = (h - m) * jax.lax.rsqrt(v + BN_EPS) * g + be
            h = _leaky_relu(h)
            # Dropout: identity in eval mode.
    return h


if __name__ == "__main__":
    input_dim, out_dim = 32, 16
    hidden_sizes = [64, 48, 32]        # hidden_layers = 3
    batch = 64

    key = jax.random.PRNGKey(0)
    kx, kp = jax.random.split(key)
    x = jax.random.normal(kx, (batch, input_dim), jnp.float32)

    raw = init_raw_params(kp, input_dim, out_dim, hidden_sizes)
    kparams = prepare_kernel_params(raw)

    # Auto tile: whole 64-row batch in one grid step, weights resident in VMEM.
    out = fnn_forward(x, kparams, out_dim=out_dim)
    out = jax.block_until_ready(out)

    ref = fnn_reference(x, raw)
    assert out.shape == (batch, out_dim)
    max_err = float(jnp.max(jnp.abs(out - ref)))
    # bf16 matmul operands + bf16 writeback (f32 accumulation) -> few 1e-3..1e-2
    # of relative error layer-over-layer.
    assert jnp.allclose(out, ref, atol=5e-2, rtol=5e-2), f"mismatch: {max_err}"

    print("KERNEL_OK")
</pallas_src>

<mosaic_0001>
module attributes {stable_mosaic.version = 11 : i64} {
  func.func @kernel(%arg0: i32, %arg1: memref<64x32xf32, #tpu.memory_space<vmem>>, %arg2: memref<32x128xbf16, #tpu.memory_space<vmem>>, %arg3: memref<1x128xf32, #tpu.memory_space<vmem>>, %arg4: memref<128x128xbf16, #tpu.memory_space<vmem>>, %arg5: memref<1x128xf32, #tpu.memory_space<vmem>>, %arg6: memref<128x128xbf16, #tpu.memory_space<vmem>>, %arg7: memref<1x128xf32, #tpu.memory_space<vmem>>, %arg8: memref<128x16xbf16, #tpu.memory_space<vmem>>, %arg9: memref<1x16xf32, #tpu.memory_space<vmem>>, %arg10: memref<64x16xbf16, #tpu.memory_space<vmem>>) attributes {dimension_semantics = [#tpu.dimension_semantics<parallel>], iteration_bounds = array<i64: 1>, scalar_prefetch = 0 : i64, scratch_operands = 0 : i64, tpu.core_type = #tpu.core_type<tc>, window_params = [{transform_indices = @transform_0, window_bounds = array<i64: 64, 32>}, {pipeline_mode = #tpu.pipeline_mode<synchronous>, transform_indices = @transform_1, window_bounds = array<i64: 32, 128>}, {pipeline_mode = #tpu.pipeline_mode<synchronous>, transform_indices = @transform_2, window_bounds = array<i64: 1, 128>}, {pipeline_mode = #tpu.pipeline_mode<synchronous>, transform_indices = @transform_3, window_bounds = array<i64: 128, 128>}, {pipeline_mode = #tpu.pipeline_mode<synchronous>, transform_indices = @transform_4, window_bounds = array<i64: 1, 128>}, {pipeline_mode = #tpu.pipeline_mode<synchronous>, transform_indices = @transform_5, window_bounds = array<i64: 128, 128>}, {pipeline_mode = #tpu.pipeline_mode<synchronous>, transform_indices = @transform_6, window_bounds = array<i64: 1, 128>}, {pipeline_mode = #tpu.pipeline_mode<synchronous>, transform_indices = @transform_7, window_bounds = array<i64: 128, 16>}, {pipeline_mode = #tpu.pipeline_mode<synchronous>, transform_indices = @transform_8, window_bounds = array<i64: 1, 16>}, {transform_indices = @transform_9, window_bounds = array<i64: 64, 16>}]} {
    %c0 = arith.constant 0 : index
    %c0_0 = arith.constant 0 : index
    %0 = vector.load %arg1[%c0, %c0_0] : memref<64x32xf32, #tpu.memory_space<vmem>>, vector<64x32xf32>
    %c0_1 = arith.constant 0 : index
    %c0_2 = arith.constant 0 : index
    %1 = vector.load %arg2[%c0_1, %c0_2] : memref<32x128xbf16, #tpu.memory_space<vmem>>, vector<32x128xbf16>
    %c0_3 = arith.constant 0 : index
    %c0_4 = arith.constant 0 : index
    %2 = vector.load %arg3[%c0_3, %c0_4] : memref<1x128xf32, #tpu.memory_space<vmem>>, vector<1x128xf32>
    %3 = arith.truncf %0 : vector<64x32xf32> to vector<64x32xbf16>
    %cst = arith.constant dense<0.000000e+00> : vector<64x128xf32>
    %4 = tpu.matmul %3, %1, %cst {dimension_numbers = #tpu.dot_dimension_numbers<[1], [0], [0], [1], [0, 0, 1, 1], [], []>} : vector<64x32xbf16>, vector<32x128xbf16>, vector<64x128xf32> -> vector<64x128xf32>
    %5 = vector.broadcast %2 : vector<1x128xf32> to vector<64x128xf32>
    %6 = arith.addf %4, %5 : vector<64x128xf32>
    %cst_5 = arith.constant 0.000000e+00 : f32
    %7 = vector.broadcast %cst_5 : f32 to vector<64x128xf32>
    %8 = arith.cmpf oge, %6, %7 : vector<64x128xf32>
    %cst_6 = arith.constant 2.000000e-01 : f32
    %9 = vector.broadcast %cst_6 : f32 to vector<64x128xf32>
    %10 = arith.mulf %9, %6 : vector<64x128xf32>
    %11 = arith.select %8, %6, %10 : vector<64x128xi1>, vector<64x128xf32>
    %c0_7 = arith.constant 0 : index
    %c0_8 = arith.constant 0 : index
    %12 = vector.load %arg4[%c0_7, %c0_8] : memref<128x128xbf16, #tpu.memory_space<vmem>>, vector<128x128xbf16>
    %c0_9 = arith.constant 0 : index
    %c0_10 = arith.constant 0 : index
    %13 = vector.load %arg5[%c0_9, %c0_10] : memref<1x128xf32, #tpu.memory_space<vmem>>, vector<1x128xf32>
    %14 = arith.truncf %11 : vector<64x128xf32> to vector<64x128xbf16>
    %cst_11 = arith.constant dense<0.000000e+00> : vector<64x128xf32>
    %15 = tpu.matmul %14, %12, %cst_11 {dimension_numbers = #tpu.dot_dimension_numbers<[1], [0], [0], [1], [0, 0, 1, 1], [], []>} : vector<64x128xbf16>, vector<128x128xbf16>, vector<64x128xf32> -> vector<64x128xf32>
    %16 = vector.broadcast %13 : vector<1x128xf32> to vector<64x128xf32>
    %17 = arith.addf %15, %16 : vector<64x128xf32>
    %cst_12 = arith.constant 0.000000e+00 : f32
    %18 = vector.broadcast %cst_12 : f32 to vector<64x128xf32>
    %19 = arith.cmpf oge, %17, %18 : vector<64x128xf32>
    %cst_13 = arith.constant 2.000000e-01 : f32
    %20 = vector.broadcast %cst_13 : f32 to vector<64x128xf32>
    %21 = arith.mulf %20, %17 : vector<64x128xf32>
    %22 = arith.select %19, %17, %21 : vector<64x128xi1>, vector<64x128xf32>
    %c0_14 = arith.constant 0 : index
    %c0_15 = arith.constant 0 : index
    %23 = vector.load %arg6[%c0_14, %c0_15] : memref<128x128xbf16, #tpu.memory_space<vmem>>, vector<128x128xbf16>
    %c0_16 = arith.constant 0 : index
    %c0_17 = arith.constant 0 : index
    %24 = vector.load %arg7[%c0_16, %c0_17] : memref<1x128xf32, #tpu.memory_space<vmem>>, vector<1x128xf32>
    %25 = arith.truncf %22 : vector<64x128xf32> to vector<64x128xbf16>
    %cst_18 = arith.constant dense<0.000000e+00> : vector<64x128xf32>
    %26 = tpu.matmul %25, %23, %cst_18 {dimension_numbers = #tpu.dot_dimension_numbers<[1], [0], [0], [1], [0, 0, 1, 1], [], []>} : vector<64x128xbf16>, vector<128x128xbf16>, vector<64x128xf32> -> vector<64x128xf32>
    %27 = vector.broadcast %24 : vector<1x128xf32> to vector<64x128xf32>
    %28 = arith.addf %26, %27 : vector<64x128xf32>
    %cst_19 = arith.constant 0.000000e+00 : f32
    %29 = vector.broadcast %cst_19 : f32 to vector<64x128xf32>
    %30 = arith.cmpf oge, %28, %29 : vector<64x128xf32>
    %cst_20 = arith.constant 2.000000e-01 : f32
    %31 = vector.broadcast %cst_20 : f32 to vector<64x128xf32>
    %32 = arith.mulf %31, %28 : vector<64x128xf32>
    %33 = arith.select %30, %28, %32 : vector<64x128xi1>, vector<64x128xf32>
    %c0_21 = arith.constant 0 : index
    %c0_22 = arith.constant 0 : index
    %34 = vector.load %arg8[%c0_21, %c0_22] : memref<128x16xbf16, #tpu.memory_space<vmem>>, vector<128x16xbf16>
    %c0_23 = arith.constant 0 : index
    %c0_24 = arith.constant 0 : index
    %35 = vector.load %arg9[%c0_23, %c0_24] : memref<1x16xf32, #tpu.memory_space<vmem>>, vector<1x16xf32>
    %36 = arith.truncf %33 : vector<64x128xf32> to vector<64x128xbf16>
    %cst_25 = arith.constant dense<0.000000e+00> : vector<64x16xf32>
    %37 = tpu.matmul %36, %34, %cst_25 {dimension_numbers = #tpu.dot_dimension_numbers<[1], [0], [0], [1], [0, 0, 1, 1], [], []>} : vector<64x128xbf16>, vector<128x16xbf16>, vector<64x16xf32> -> vector<64x16xf32>
    %38 = vector.broadcast %35 : vector<1x16xf32> to vector<64x16xf32>
    %39 = arith.addf %37, %38 : vector<64x16xf32>
    %40 = arith.truncf %39 : vector<64x16xf32> to vector<64x16xbf16>
    %c0_26 = arith.constant 0 : index
    %c0_27 = arith.constant 0 : index
    %41 = vector.load %arg10[%c0_26, %c0_27] : memref<64x16xbf16, #tpu.memory_space<vmem>>, vector<64x16xbf16>
    tpu.vector_store %arg10[%c0_26, %c0_27], %40 {strides = array<i32>} : memref<64x16xbf16, #tpu.memory_space<vmem>>, vector<64x16xbf16>,
    return
  }
  func.func @transform_0(%arg0: i32) -> (i32, i32) {
    %c0_i32 = arith.constant 0 : i32
    %c0_i32_0 = arith.constant 0 : i32
    return %arg0, %c0_i32 : i32, i32
  }
  func.func @transform_1(%arg0: i32) -> (i32, i32) {
    %c0_i32 = arith.constant 0 : i32
    %c0_i32_0 = arith.constant 0 : i32
    %c0_i32_1 = arith.constant 0 : i32
    return %c0_i32, %c0_i32_0 : i32, i32
  }
  func.func @transform_2(%arg0: i32) -> (i32, i32) {
    %c0_i32 = arith.constant 0 : i32
    %c0_i32_0 = arith.constant 0 : i32
    %c0_i32_1 = arith.constant 0 : i32
    return %c0_i32, %c0_i32_0 : i32, i32
  }
  func.func @transform_3(%arg0: i32) -> (i32, i32) {
    %c0_i32 = arith.constant 0 : i32
    %c0_i32_0 = arith.constant 0 : i32
    %c0_i32_1 = arith.constant 0 : i32
    return %c0_i32, %c0_i32_0 : i32, i32
  }
  func.func @transform_4(%arg0: i32) -> (i32, i32) {
    %c0_i32 = arith.constant 0 : i32
    %c0_i32_0 = arith.constant 0 : i32
    %c0_i32_1 = arith.constant 0 : i32
    return %c0_i32, %c0_i32_0 : i32, i32
  }
  func.func @transform_5(%arg0: i32) -> (i32, i32) {
    %c0_i32 = arith.constant 0 : i32
    %c0_i32_0 = arith.constant 0 : i32
    %c0_i32_1 = arith.constant 0 : i32
    return %c0_i32, %c0_i32_0 : i32, i32
  }
  func.func @transform_6(%arg0: i32) -> (i32, i32) {
    %c0_i32 = arith.constant 0 : i32
    %c0_i32_0 = arith.constant 0 : i32
    %c0_i32_1 = arith.constant 0 : i32
    return %c0_i32, %c0_i32_0 : i32, i32
  }
  func.func @transform_7(%arg0: i32) -> (i32, i32) {
    %c0_i32 = arith.constant 0 : i32
    %c0_i32_0 = arith.constant 0 : i32
    %c0_i32_1 = arith.constant 0 : i32
    return %c0_i32, %c0_i32_0 : i32, i32
  }
  func.func @transform_8(%arg0: i32) -> (i32, i32) {
    %c0_i32 = arith.constant 0 : i32
    %c0_i32_0 = arith.constant 0 : i32
    %c0_i32_1 = arith.constant 0 : i32
    return %c0_i32, %c0_i32_0 : i32, i32
  }
  func.func @transform_9(%arg0: i32) -> (i32, i32) {
    %c0_i32 = arith.constant 0 : i32
    %c0_i32_0 = arith.constant 0 : i32
    return %arg0, %c0_i32 : i32, i32
  }
}

</mosaic_0001>

<bundles_post_ra>
// kernel: fnn_forward.1
= control target key start
LH: loop header
LB: loop body
LE: loop exit
PB: predicated region body
PF: predicated region fallthrough
CT: control target
= control target key end

     0   :  { %vm68_vm0 = vcmask 261120   ;;  %s1085_s1 = inlined_call_operand.vmem [shape: bf16[32,128], index: 1, kind: input, shape index: {}]   ;;  %s1086_s0 = inlined_call_operand.vmem [shape: f32[64,32], index: 0, kind: input, shape index: {}]   ;;  %s1087_s3 = inlined_call_operand.vmem [shape: bf16[128,128], index: 3, kind: input, shape index: {}]   ;;  %s1088_s5 = inlined_call_operand.vmem [shape: bf16[128,128], index: 5, kind: input, shape index: {}]   ;;  %s1089_s2 = inlined_call_operand.vmem [shape: f32[1,128], index: 2, kind: input, shape index: {}]   ;;  %s1090_s7 = inlined_call_operand.vmem [shape: bf16[128,16], index: 7, kind: input, shape index: {}]   ;;  %s1091_s4 = inlined_call_operand.vmem [shape: f32[1,128], index: 4, kind: input, shape index: {}]   ;;  %s1092_s6 = inlined_call_operand.vmem [shape: f32[1,128], index: 6, kind: input, shape index: {}]   ;;  %s1093_s8 = inlined_call_operand.vmem [shape: f32[1,16], index: 8, kind: input, shape index: {}]   ;;  %s1094_s9 = inlined_call_operand.vmem [shape: bf16[64,16], index: 9, kind: output, shape index: {}]  }
   0x1   :  { %v859_v0 = vld [vmem:[%s1085_s1 + $0x8] sm:$0xff]   ;;  %v860_v1 = vld [vmem:[%s1085_s1] sm:$0xff]   ;;  %v35_v5 = vld [vmem:[%s1086_s0 + $0x10] sm:$0xff] }
   0x2   :  { %775 = vmatprep.subr.bf16.mxu0 %v859_v0  ;;  %v33_v2 = vld [vmem:[%s1086_s0] sm:$0xff]  ;;  %v34_v3 = vld [vmem:[%s1086_s0 + $0x8] sm:$0xff]  ;;  %v36_v6 = vld [vmem:[%s1086_s0 + $0x18] sm:$0xff] }
   0x3   :  { %776 = vmatpush3.bf16.msra.mxu0 %v859_v0  ;;  %v46_v4 = vpack.c.bf16 %v34_v3, %v33_v2  ;;  %v37_v7 = vld [vmem:[%s1086_s0 + $0x20] sm:$0xff]  ;;  %v38_v8 = vld [vmem:[%s1086_s0 + $0x28] sm:$0xff]  ;;  %v861_v9 = vld [vmem:[%s1087_s3 + $0x38] sm:$0xff]   ;;  %v47_v10 = vpack.c.bf16 %v36_v6, %v35_v5 }
   0x4   :  { %777 = vmatprep.subr.bf16.mxu0 %v860_v1  ;;  %v862_v11 = vld [vmem:[%s1087_s3 + $0x30] sm:$0xff]   ;;  %v48_v12 = vpack.c.bf16 %v38_v8, %v37_v7  ;;  %787 = vmatprep.subr.bf16.mxu1 %v861_v9  ;;  %v863_v14 = vld [vmem:[%s1087_s3 + $0x28] sm:$0xff]   ;;  %v40_v15 = vld [vmem:[%s1086_s0 + $0x38] sm:$0xff] }
   0x5   :  { %779 = vmatprep.mubr.msk.bf16.mxu0 %vm68_vm0, %v46_v4  ;;  %788 = vmatpush3.bf16.msra.mxu1 %v861_v9  ;;  %v39_v13 = vld [vmem:[%s1086_s0 + $0x30] sm:$0xff]  ;;  %v864_v16 = vld [vmem:[%s1087_s3 + $0x20] sm:$0xff]   ;;  %v865_v18 = vld [vmem:[%s1087_s3 + $0x18] sm:$0xff]  }
   0x6   :  { %789 = vmatprep.subr.bf16.mxu1 %v862_v11  ;;  %v49_v17 = vpack.c.bf16 %v40_v15, %v39_v13  ;;  %v866_v19 = vld [vmem:[%s1087_s3 + $0x10] sm:$0xff]   ;;  %v867_v20 = vld [vmem:[%s1087_s3 + $0x8] sm:$0xff]   ;;  %v868_v21 = vld [vmem:[%s1087_s3] sm:$0xff]  }
   0x7   :  { %778 = vmatpush3.bf16.msra.mxu0 %v860_v1  ;;  %v869_v22 = vld [vmem:[%s1088_s5 + $0x38] sm:$0xff]   ;;  %v870_v23 = vld [vmem:[%s1088_s5 + $0x30] sm:$0xff]   ;;  %v871_v24 = vld [vmem:[%s1088_s5 + $0x28] sm:$0xff]  }
   0x8   :  { %811 = vmatprep.subr.bf16.mxu0 %v869_v22  ;;  %v872_v25 = vld [vmem:[%s1088_s5 + $0x20] sm:$0xff]   ;;  %v873_v26 = vld [vmem:[%s1088_s5 + $0x18] sm:$0xff]   ;;  %v874_v0 = vld [vmem:[%s1088_s5 + $0x10] sm:$0xff]  }
   0x9   :  { %790 = vmatpush3.bf16.msra.mxu1 %v862_v11  ;;  %v683_v28 = vld [vmem:[%s1089_s2] ss:$0 sm:$0xff]  ;;  %v875_v1 = vld [vmem:[%s1088_s5 + $0x8] sm:$0xff]   ;;  %v877_v3 = vld [vmem:[%s1090_s7 + $0x38] sm:$0xff]  }
   0xa   :  { %780 = vmatmul.mubr.msk.bf16.vlgmr.msra.gmra.mxu0 %vm68_vm0, %v47_v10  ;;  %791 = vmatprep.subr.bf16.mxu1 %v863_v14  ;;  %v876_v2 = vld [vmem:[%s1088_s5] sm:$0xff]   ;;  %v878_v4 = vld [vmem:[%s1090_s7 + $0x30] sm:$0xff]   ;;  %v879_v5 = vld [vmem:[%s1090_s7 + $0x28] sm:$0xff]  }
   0xb   :  { %783 = vmatprep.mubr.msk.bf16.mxu0 %vm68_vm0, %v48_v12  ;;  %812 = vmatpush3.bf16.msra.mxu0 %v869_v22  ;;  %v880_v6 = vld [vmem:[%s1090_s7 + $0x20] sm:$0xff]   ;;  %v881_v7 = vld [vmem:[%s1090_s7 + $0x18] sm:$0xff]  }
   0xc   :  { %813 = vmatprep.subr.bf16.mxu0 %v870_v23  ;;  %v690_v9 = vld [vmem:[%s1091_s4] ss:$0 sm:$0xff] }
   0xd   :  { %792 = vmatpush3.bf16.msra.mxu1 %v863_v14 }
   0xe   :  { %793 = vmatprep.subr.bf16.mxu1 %v864_v16 }
   0xf   :  { %814 = vmatpush3.bf16.msra.mxu0 %v870_v23 }
  0x10   :  { %815 = vmatprep.subr.bf16.mxu0 %v871_v24 }
  0x11   :  { %794 = vmatpush3.bf16.msra.mxu1 %v864_v16 }
  0x12   :  { %784 = vmatmul.mubr.msk.bf16.gmra.mxu0 %vm68_vm0, %v49_v17  ;;  %795 = vmatprep.subr.bf16.mxu1 %v865_v18 }
  0x13   :  { %816 = vmatpush3.bf16.msra.mxu0 %v871_v24 }
  0x14   :  { %817 = vmatprep.subr.bf16.mxu0 %v872_v25 }
  0x15   :  { %796 = vmatpush3.bf16.msra.mxu1 %v865_v18 }
  0x16   :  { %797 = vmatprep.subr.bf16.mxu1 %v866_v19 }
  0x17   :  { %818 = vmatpush3.bf16.msra.mxu0 %v872_v25 }
  0x18   :  { %819 = vmatprep.subr.bf16.mxu0 %v873_v26 }
  0x19   :  { %798 = vmatpush3.bf16.msra.mxu1 %v866_v19 }
  0x1a   :  { %799 = vmatprep.subr.bf16.mxu1 %v867_v20 }
  0x1b   :  { %820 = vmatpush3.bf16.msra.mxu0 %v873_v26 }
  0x1c   :  { %821 = vmatprep.subr.bf16.mxu0 %v874_v0 }
  0x1d   :  { %800 = vmatpush3.bf16.msra.mxu1 %v867_v20 }
  0x1e   :  { %801 = vmatprep.subr.bf16.mxu1 %v868_v21 }
  0x1f   :  { %822 = vmatpush3.bf16.msra.mxu0 %v874_v0 }
  0x20   :  { %823 = vmatprep.subr.bf16.mxu0 %v875_v1 }
  0x21   :  { %802 = vmatpush3.bf16.msra.mxu1 %v868_v21 }
  0x22   :  { %835 = vmatprep.subr.bf16.mxu1 %v877_v3 }
  0x23   :  { %824 = vmatpush3.bf16.msra.mxu0 %v875_v1 }
  0x24   :  { %825 = vmatprep.subr.bf16.mxu0 %v876_v2 }
  0x27   :  { %826 = vmatpush3.bf16.msra.mxu0 %v876_v2 }
  0xca   :  { %v781_v27 = vpop.f32.mrf.mxu0 }
  0xcb   :  { %v124_v31 = vadd.f32 %v781_v27, %v683_v28 }
  0xcc   :  { %v115_v29 = vpop.f32.mrf.mxu0 }
  0xcd   :  { %v116_v30 = vadd.f32 %v683_v28, %v115_v29  ;;  %v156_v38 = vmul.f32 0.2, %v124_v31  ;;  %vm148_vm3 = vcmp.ge.f32.partialorder %v124_v31, 0.0 }
  0xce   :  { %v782_v32 = vpop.f32.mrf.mxu0 }
  0xcf   :  { %v127_v33 = vadd.f32 %v782_v32, %v683_v28  ;;  %v154_v35 = vmul.f32 0.2, %v116_v30  ;;  %vm146_vm2 = vcmp.ge.f32.partialorder %v116_v30, 0.0  ;;  %v164_v49 = vsel %vm148_vm3, %v124_v31, %v156_v38 }
  0xd0   :  { %v118_v34 = vpop.f32.mrf.mxu0 }
  0xd1   :  { %vm149_vm1 = vcmp.ge.f32.partialorder %v127_v33, 0.0  ;;  %v157_v36 = vmul.f32 0.2, %v127_v33  ;;  %v119_v37 = vadd.f32 %v683_v28, %v118_v34  ;;  %v162_v44 = vsel %vm146_vm2, %v116_v30, %v154_v35 }
  0xd2   :  { %v785_v39 = vpop.f32.mrf.mxu0 }
  0xd3   :  { %v155_v40 = vmul.f32 0.2, %v119_v37  ;;  %vm147_vm4 = vcmp.ge.f32.partialorder %v119_v37, 0.0  ;;  %v165_v42 = vsel %vm149_vm1, %v127_v33, %v157_v36  ;;  %v140_v46 = vadd.f32 %v785_v39, %v683_v28 }
  0xd4   :  { %v131_v41 = vpop.f32.mrf.mxu0  ;;  %v188_v51 = vpack.c.bf16 %v165_v42, %v164_v49  ;;  %v699_v49 = vld [vmem:[%s1092_s6] ss:$0 sm:$0xff] }
  0xd5   :  { %v132_v43 = vadd.f32 %v683_v28, %v131_v41  ;;  %v163_v45 = vsel %vm147_vm4, %v119_v37, %v155_v40  ;;  %v160_v56 = vmul.f32 0.2, %v140_v46  ;;  %vm152_vm7 = vcmp.ge.f32.partialorder %v140_v46, 0.0 }
  0xd6   :  { %v786_v47 = vpop.f32.mrf.mxu0  ;;  %v187_v48 = vpack.c.bf16 %v163_v45, %v162_v44  ;;  %v882_v45 = vld [vmem:[%s1090_s7 + $0x10] sm:$0xff]  }
  0xd7   :  { %v143_v50 = vadd.f32 %v786_v47, %v683_v28  ;;  %v158_v53 = vmul.f32 0.2, %v132_v43  ;;  %vm150_vm6 = vcmp.ge.f32.partialorder %v132_v43, 0.0  ;;  %v168_v62 = vsel %vm152_vm7, %v140_v46, %v160_v56  ;;  %v883_v46 = vld [vmem:[%s1090_s7 + $0x8] sm:$0xff]   ;;  %v884_v47 = vld [vmem:[%s1090_s7] sm:$0xff]  }
  0xd8   :  { %v134_v52 = vpop.f32.mrf.mxu0  ;;  %803 = vmatprep.mubr.bf16.mxu1 %v187_v48 }
  0xd9   :  { %vm153_vm5 = vcmp.ge.f32.partialorder %v143_v50, 0.0  ;;  %v161_v54 = vmul.f32 0.2, %v143_v50  ;;  %v135_v55 = vadd.f32 %v683_v28, %v134_v52  ;;  %804 = vmatmul.mubr.bf16.vlgmr.msra.gmra.mxu1 %v188_v51  ;;  %v166_v59 = vsel %vm150_vm6, %v132_v43, %v158_v53 }
  0xda   :  { %836 = vmatpush3.bf16.msra.mxu1 %v877_v3 }
  0xdb   :  { %vm151_vm8 = vcmp.ge.f32.partialorder %v135_v55, 0.0  ;;  %v159_v57 = vmul.f32 0.2, %v135_v55  ;;  %v169_v58 = vsel %vm153_vm5, %v143_v50, %v161_v54  ;;  %837 = vmatprep.subr.bf16.mxu1 %v878_v4 }
  0xdc   :  { %v190_v63 = vpack.c.bf16 %v169_v58, %v168_v62 }
  0xdd   :  { %v167_v60 = vsel %vm151_vm8, %v135_v55, %v159_v57 }
  0xde   :  { %v189_v61 = vpack.c.bf16 %v167_v60, %v166_v59  ;;  %838 = vmatpush3.bf16.msra.mxu1 %v878_v4 }
  0xdf   :  { %839 = vmatprep.subr.bf16.mxu1 %v879_v5 }
  0xe0   :  { %807 = vmatprep.mubr.bf16.mxu1 %v189_v61 }
  0xe1   :  { %808 = vmatmul.mubr.bf16.gmra.mxu1 %v190_v63 }
  0xe2   :  { %840 = vmatpush3.bf16.msra.mxu1 %v879_v5 }
  0xe3   :  { %841 = vmatprep.subr.bf16.mxu1 %v880_v6 }
  0xe6   :  { %842 = vmatpush3.bf16.msra.mxu1 %v880_v6 }
  0xe7   :  { %843 = vmatprep.subr.bf16.mxu1 %v881_v7 }
  0xea   :  { %844 = vmatpush3.bf16.msra.mxu1 %v881_v7 }
  0xeb   :  { %845 = vmatprep.subr.bf16.mxu1 %v882_v45 }
  0xee   :  { %846 = vmatpush3.bf16.msra.mxu1 %v882_v45 }
  0xef   :  { %847 = vmatprep.subr.bf16.mxu1 %v883_v46 }
  0xf2   :  { %848 = vmatpush3.bf16.msra.mxu1 %v883_v46 }
  0xf3   :  { %849 = vmatprep.subr.bf16.mxu1 %v884_v47 }
  0xf6   :  { %850 = vmatpush3.bf16.msra.mxu1 %v884_v47 }
 0x199   :  { %v805_v8 = vpop.f32.mrf.mxu1 }
 0x19a   :  { %v288_v12 = vadd.f32 %v805_v8, %v690_v9 }
 0x19b   :  { %v279_v10 = vpop.f32.mrf.mxu1 }
 0x19c   :  { %v280_v11 = vadd.f32 %v690_v9, %v279_v10  ;;  %v320_v19 = vmul.f32 0.2, %v288_v12  ;;  %vm312_vm11 = vcmp.ge.f32.partialorder %v288_v12, 0.0 }
 0x19d   :  { %v806_v13 = vpop.f32.mrf.mxu1 }
 0x19e   :  { %v291_v14 = vadd.f32 %v806_v13, %v690_v9  ;;  %v318_v16 = vmul.f32 0.2, %v280_v11  ;;  %vm310_vm10 = vcmp.ge.f32.partialorder %v280_v11, 0.0  ;;  %v328_v27 = vsel %vm312_vm11, %v288_v12, %v320_v19 }
 0x19f   :  { %v282_v15 = vpop.f32.mrf.mxu1 }
 0x1a0   :  { %vm313_vm9 = vcmp.ge.f32.partialorder %v291_v14, 0.0  ;;  %v321_v17 = vmul.f32 0.2, %v291_v14  ;;  %v283_v18 = vadd.f32 %v690_v9, %v282_v15  ;;  %v326_v25 = vsel %vm310_vm10, %v280_v11, %v318_v16 }
 0x1a1   :  { %v809_v20 = vpop.f32.mrf.mxu1 }
 0x1a2   :  { %vm311_vm12 = vcmp.ge.f32.partialorder %v283_v18, 0.0  ;;  %v319_v21 = vmul.f32 0.2, %v283_v18  ;;  %v329_v22 = vsel %vm313_vm9, %v291_v14, %v321_v17  ;;  %v304_v28 = vadd.f32 %v809_v20, %v690_v9 }
 0x1a3   :  { %v295_v23 = vpop.f32.mrf.mxu1  ;;  %v352_v31 = vpack.c.bf16 %v329_v22, %v328_v27  ;;  %vm670_vm9 = vcmask 125952  }
 0x1a4   :  { %v296_v24 = vadd.f32 %v690_v9, %v295_v23  ;;  %v327_v26 = vsel %vm311_vm12, %v283_v18, %v319_v21  ;;  %v324_v37 = vmul.f32 0.2, %v304_v28  ;;  %vm316_vm15 = vcmp.ge.f32.partialorder %v304_v28, 0.0  ;;  %v708_v21 = vld [vmem:[%s1093_s8] ss:$0 sm:$0xff] }
 0x1a5   :  { %v810_v29 = vpop.f32.mrf.mxu1  ;;  %v351_v30 = vpack.c.bf16 %v327_v26, %v326_v25 }
 0x1a6   :  { %v307_v32 = vadd.f32 %v810_v29, %v690_v9  ;;  %v322_v34 = vmul.f32 0.2, %v296_v24  ;;  %vm314_vm14 = vcmp.ge.f32.partialorder %v296_v24, 0.0  ;;  %v332_v43 = vsel %vm316_vm15, %v304_v28, %v324_v37 }
 0x1a7   :  { %v298_v33 = vpop.f32.mrf.mxu1  ;;  %827 = vmatprep.mubr.bf16.mxu0 %v351_v30 }
 0x1a8   :  { %vm317_vm13 = vcmp.ge.f32.partialorder %v307_v32, 0.0  ;;  %v325_v35 = vmul.f32 0.2, %v307_v32  ;;  %v299_v36 = vadd.f32 %v690_v9, %v298_v33  ;;  %828 = vmatmul.mubr.bf16.vlgmr.msra.gmra.mxu0 %v352_v31  ;;  %v330_v40 = vsel %vm314_vm14, %v296_v24, %v322_v34 }
 0x1aa   :  { %vm315_vm0 = vcmp.ge.f32.partialorder %v299_v36, 0.0  ;;  %v323_v38 = vmul.f32 0.2, %v299_v36  ;;  %v333_v39 = vsel %vm317_vm13, %v307_v32, %v325_v35 }
 0x1ab   :  { %v354_v44 = vpack.c.bf16 %v333_v39, %v332_v43 }
 0x1ac   :  { %v331_v41 = vsel %vm315_vm0, %v299_v36, %v323_v38 }
 0x1ad   :  { %v353_v42 = vpack.c.bf16 %v331_v41, %v330_v40 }
 0x1af   :  { %831 = vmatprep.mubr.bf16.mxu0 %v353_v42 }
 0x1b0   :  { %832 = vmatmul.mubr.bf16.gmra.mxu0 %v354_v44 }
 0x268   :  { %v829_v48 = vpop.f32.mrf.mxu0 }
 0x269   :  { %v452_v52 = vadd.f32 %v829_v48, %v699_v49 }
 0x26a   :  { %v443_v50 = vpop.f32.mrf.mxu0 }
 0x26b   :  { %v444_v51 = vadd.f32 %v699_v49, %v443_v50  ;;  %v484_v59 = vmul.f32 0.2, %v452_v52  ;;  %vm476_vm3 = vcmp.ge.f32.partialorder %v452_v52, 0.0 }
 0x26c   :  { %v830_v53 = vpop.f32.mrf.mxu0 }
 0x26d   :  { %v455_v54 = vadd.f32 %v830_v53, %v699_v49  ;;  %v482_v56 = vmul.f32 0.2, %v444_v51  ;;  %vm474_vm2 = vcmp.ge.f32.partialorder %v444_v51, 0.0  ;;  %v492_v3 = vsel %vm476_vm3, %v452_v52, %v484_v59 }
 0x26e   :  { %v446_v55 = vpop.f32.mrf.mxu0 }
 0x26f   :  { %vm477_vm1 = vcmp.ge.f32.partialorder %v455_v54, 0.0  ;;  %v485_v57 = vmul.f32 0.2, %v455_v54  ;;  %v447_v58 = vadd.f32 %v699_v49, %v446_v55  ;;  %v490_v1 = vsel %vm474_vm2, %v444_v51, %v482_v56 }
 0x270   :  { %v833_v60 = vpop.f32.mrf.mxu0 }
 0x271   :  { %vm475_vm4 = vcmp.ge.f32.partialorder %v447_v58, 0.0  ;;  %v483_v61 = vmul.f32 0.2, %v447_v58  ;;  %v493_v62 = vsel %vm477_vm1, %v455_v54, %v485_v57  ;;  %v468_v4 = vadd.f32 %v833_v60, %v699_v49 }
 0x272   :  { %v459_v63 = vpop.f32.mrf.mxu0  ;;  %v516_v7 = vpack.c.bf16 %v493_v62, %v492_v3 }
 0x273   :  { %v460_v0 = vadd.f32 %v699_v49, %v459_v63  ;;  %v491_v2 = vsel %vm475_vm4, %v447_v58, %v483_v61  ;;  %v488_v13 = vmul.f32 0.2, %v468_v4  ;;  %vm480_vm7 = vcmp.ge.f32.partialorder %v468_v4, 0.0 }
 0x274   :  { %v834_v5 = vpop.f32.mrf.mxu0  ;;  %v515_v6 = vpack.c.bf16 %v491_v2, %v490_v1 }
 0x275   :  { %v471_v8 = vadd.f32 %v834_v5, %v699_v49  ;;  %v486_v10 = vmul.f32 0.2, %v460_v0  ;;  %vm478_vm6 = vcmp.ge.f32.partialorder %v460_v0, 0.0  ;;  %v496_v19 = vsel %vm480_vm7, %v468_v4, %v488_v13 }
 0x276   :  { %v462_v9 = vpop.f32.mrf.mxu0  ;;  %851 = vmatprep.mubr.bf16.mxu1 %v515_v6 }
 0x277   :  { %vm481_vm5 = vcmp.ge.f32.partialorder %v471_v8, 0.0  ;;  %v489_v11 = vmul.f32 0.2, %v471_v8  ;;  %v463_v12 = vadd.f32 %v699_v49, %v462_v9  ;;  %852 = vmatmul.mubr.bf16.vlgmr.msra.gmra.mxu1 %v516_v7  ;;  %v494_v16 = vsel %vm478_vm6, %v460_v0, %v486_v10 }
 0x279   :  { %vm479_vm8 = vcmp.ge.f32.partialorder %v463_v12, 0.0  ;;  %v487_v14 = vmul.f32 0.2, %v463_v12  ;;  %v497_v15 = vsel %vm481_vm5, %v471_v8, %v489_v11 }
 0x27a   :  { %v518_v20 = vpack.c.bf16 %v497_v15, %v496_v19 }
 0x27b   :  { %v495_v17 = vsel %vm479_vm8, %v463_v12, %v487_v14 }
 0x27c   :  { %v517_v18 = vpack.c.bf16 %v495_v17, %v494_v16 }
 0x27e   :  { %855 = vmatprep.mubr.bf16.mxu1 %v517_v18 }
 0x27f   :  { %856 = vmatmul.mubr.bf16.gmra.mxu1 %v518_v20 }
 0x337   :  { %v853_v22 = vpop.f32.mrf.mxu1 }
 0x338   :  { %v616_v23 = vadd.f32 %v853_v22, %v708_v21 }
 0x339   :  { %v607_v24 = vpop.f32.mrf.mxu1 }
 0x33a   :  { %v727_v25 = vpack.c.bf16 %v616_v23, %v616_v23  ;;  %v608_v26 = vadd.f32 %v708_v21, %v607_v24 }
 0x33b   :  { %v854_v27 = vpop.f32.mrf.mxu1 }
 0x33c   :  { %673 = vst.msk [vmem:[%s1094_s9 + $0x8] sm:$0xf] %vm670_vm9, %v727_v25  ;;  %v725_v28 = vpack.c.bf16 %v608_v26, %v608_v26  ;;  %v619_v29 = vadd.f32 %v854_v27, %v708_v21 }
 0x33d   :  { %v610_v30 = vpop.f32.mrf.mxu1 }
 0x33e   :  { %671 = vst.msk [vmem:[%s1094_s9] sm:$0xf] %vm670_vm9, %v725_v28  ;;  %v728_v31 = vpack.c.bf16 %v619_v29, %v619_v29  ;;  %v611_v32 = vadd.f32 %v708_v21, %v610_v30 }
 0x33f   :  { %v857_v33 = vpop.f32.mrf.mxu1 }
 0x340   :  { %674 = vst.msk [vmem:[%s1094_s9 + $0xc] sm:$0xf] %vm670_vm9, %v728_v31  ;;  %v726_v34 = vpack.c.bf16 %v611_v32, %v611_v32  ;;  %v632_v35 = vadd.f32 %v857_v33, %v708_v21 }
 0x341   :  { %v623_v36 = vpop.f32.mrf.mxu1 }
 0x342   :  { %672 = vst.msk [vmem:[%s1094_s9 + $0x4] sm:$0xf] %vm670_vm9, %v726_v34  ;;  %v731_v37 = vpack.c.bf16 %v632_v35, %v632_v35  ;;  %v624_v38 = vadd.f32 %v708_v21, %v623_v36 }
 0x343   :  { %v858_v39 = vpop.f32.mrf.mxu1 }
 0x344   :  { %677 = vst.msk [vmem:[%s1094_s9 + $0x18] sm:$0xf] %vm670_vm9, %v731_v37  ;;  %v729_v40 = vpack.c.bf16 %v624_v38, %v624_v38  ;;  %v635_v41 = vadd.f32 %v858_v39, %v708_v21 }
 0x345   :  { %v626_v42 = vpop.f32.mrf.mxu1 }
 0x346   :  { %675 = vst.msk [vmem:[%s1094_s9 + $0x10] sm:$0xf] %vm670_vm9, %v729_v40  ;;  %v732_v43 = vpack.c.bf16 %v635_v41, %v635_v41  ;;  %v627_v44 = vadd.f32 %v708_v21, %v626_v42 }
 0x348   :  { %678 = vst.msk [vmem:[%s1094_s9 + $0x1c] sm:$0xf] %vm670_vm9, %v732_v43  ;;  %v730_v45 = vpack.c.bf16 %v627_v44, %v627_v44 }
 0x34a   :  { %676 = vst.msk [vmem:[%s1094_s9 + $0x14] sm:$0xf] %vm670_vm9, %v730_v45 }

</bundles_post_ra>
